<compile_context>
chip_gen: v7x
topology: tpu7x:2x2x1
jax: 0.10.0
libtpu: 0.0.40
codegen_flags: <defaults>
</compile_context>

<pallas_src>
import functools

import jax
import jax.numpy as jnp
from jax.experimental import pallas as pl
from jax.experimental.pallas import tpu as pltpu


def scaled_bell_distribution_capped_at_2_times_sigma(n, center, sigma):
    """Deterministic stand-in for the module's init helper: a Gaussian bell
    over the output indices, with the argument clamped to +/- 2*sigma."""
    idx = jnp.arange(n, dtype=jnp.float32)
    dist = jnp.clip(idx - center, -2.0 * sigma, 2.0 * sigma)
    return jnp.exp(-0.5 * (dist / sigma) ** 2)


def _round_up(n, m):
    return ((n + m - 1) // m) * m


def net_kernel(x_ref, w1_ref, b1_ref, decay_ref,
               wrnn_ref, brnn_ref, wout_ref, bout_ref,
               out_ref, *, num_steps, batch_pad):
    T = num_steps
    Bp = batch_pad
    hs_p = w1_ref.shape[1]

    # ---- 1) state-independent input projection, hoisted out of the
    #         recurrence: one big-M batched matmul over all timesteps. ----
    new_x_all = (jnp.dot(x_ref[...], w1_ref[...],
                         preferred_element_type=jnp.float32)
                 + b1_ref[...])                              # (T*Bp, hs_p)

    # ---- 2) hoist row->tile broadcasts above the unrolled loop ----
    decay = jnp.broadcast_to(decay_ref[...], (Bp, hs_p))
    brnn = jnp.broadcast_to(brnn_ref[...], (Bp, hs_p))
    wrnn = wrnn_ref[...]                                     # (2*hs_p, hs_p)

    pot = jnp.zeros((Bp, hs_p), jnp.float32)
    hid = jnp.zeros((Bp, hs_p), jnp.float32)

    # ---- 3) fully-unrolled recurrence (T is small and static) ----
    for t in range(T):
        pot = pot + new_x_all[t * Bp:(t + 1) * Bp, :]        # static slice
        act = jnp.maximum(pot, 0.0)                          # relu(potential)
        pot = jnp.minimum(pot, 0.0) * decay                  # (pot-relu)*decay

        # fused RNNCell: [act | h_{t-1}] @ [W_ih ; W_hh]  (single K=2*hs_p dot)
        ah = jnp.concatenate([act, hid], axis=-1)            # (Bp, 2*hs_p)
        hid = jnp.tanh(
            jnp.dot(ah, wrnn, preferred_element_type=jnp.float32) + brnn)

    # ---- 4) final projection of the last hidden state ----
    out_ref[...] = (jnp.dot(hid, wout_ref[...],
                            preferred_element_type=jnp.float32)
                    + bout_ref[...]).astype(out_ref.dtype)


def net_forward(data, w1, b1, decay, w_ih, b_ih, w_hh, b_hh, w_out, b_out):
    T, B, inp = data.shape
    hs = w1.shape[1]
    out = w_out.shape[1]

    # Pad to TPU-friendly (sublane=8, lane=128) multiples so every vreg
    # load/store in the kernel is unmasked (lane-dense). Zero padding is
    # exact: padded rows/cols never contaminate the real outputs.
    Bp = _round_up(B, 8)
    inp_p = _round_up(inp, 128)
    hs_p = _round_up(hs, 128)
    out_p = _round_up(out, 128)

    f32 = jnp.float32
    data_p = jnp.pad(data.astype(f32), ((0, 0), (0, Bp - B), (0, inp_p - inp)))
    data_flat = data_p.reshape(T * Bp, inp_p)        # lane-dense 2-D slab
    w1_p = jnp.pad(w1.astype(f32), ((0, inp_p - inp), (0, hs_p - hs)))
    b1_p = jnp.pad(b1.astype(f32), (0, hs_p - hs)).reshape(1, hs_p)
    decay_p = jnp.pad(decay.astype(f32), (0, hs_p - hs)).reshape(1, hs_p)

    # Fused recurrent weight [W_ih ; W_hh] and combined bias (b_ih + b_hh).
    wih_p = jnp.pad(w_ih.astype(f32), ((0, hs_p - hs), (0, hs_p - hs)))
    whh_p = jnp.pad(w_hh.astype(f32), ((0, hs_p - hs), (0, hs_p - hs)))
    wrnn_p = jnp.concatenate([wih_p, whh_p], axis=0)          # (2*hs_p, hs_p)
    brnn_p = jnp.pad((b_ih + b_hh).astype(f32), (0, hs_p - hs)).reshape(1, hs_p)

    wout_p = jnp.pad(w_out.astype(f32), ((0, hs_p - hs), (0, out_p - out)))
    bout_p = jnp.pad(b_out.astype(f32), (0, out_p - out)).reshape(1, out_p)

    # Single invocation: no grid, every operand is a whole-array VMEM block
    # (total footprint here is a few hundred KiB, far under any VMEM limit).
    vmem = pl.BlockSpec(memory_space=pltpu.MemorySpace.VMEM)
    kernel = functools.partial(net_kernel, num_steps=T, batch_pad=Bp)

    out_padded = pl.pallas_call(
        kernel,
        out_shape=jax.ShapeDtypeStruct((Bp, out_p), f32),
        in_specs=[vmem] * 8,
        out_specs=vmem,
    )(data_flat, w1_p, b1_p, decay_p, wrnn_p, brnn_p, wout_p, bout_p)

    return out_padded[:B, :out]


def net_reference(data, w1, b1, decay, w_ih, b_ih, w_hh, b_hh, w_out, b_out):
    """Pure-JAX reference matching the PyTorch Net.forward semantics."""
    T, B, _ = data.shape
    hs = w1.shape[1]
    pot = jnp.zeros((B, hs), jnp.float32)
    hid = jnp.zeros((B, hs), jnp.float32)
    for t in range(T):
        x = data[t]
        new_x = x @ w1 + b1
        pot = pot + new_x
        act = jnp.maximum(pot, 0.0)
        pot = (pot - act) * decay
        hid = jnp.tanh(act @ w_ih + b_ih + hid @ w_hh + b_hh)
    return hid @ w_out + b_out


if __name__ == "__main__":
    key = jax.random.PRNGKey(0)
    keys = jax.random.split(key, 10)

    seq_len = 8
    batch = 4
    input_size = 32
    hidden_size = 64
    output_size = 16
    init_decay_center = hidden_size / 2.0
    init_decay_sigma = hidden_size / 8.0

    # data layout matches the PyTorch module: (seq, batch, input_size)
    data = jax.random.normal(keys[0], (seq_len, batch, input_size),
                             dtype=jnp.float32)

    # Parameters, stored as (in_features, out_features) so kernels do x @ W.
    w1 = jax.random.normal(keys[1], (input_size, hidden_size), jnp.float32) * 0.1
    b1 = jax.random.normal(keys[2], (hidden_size,), jnp.float32) * 0.1
    decay = scaled_bell_distribution_capped_at_2_times_sigma(
        hidden_size, init_decay_center, init_decay_sigma)
    w_ih = jax.random.normal(keys[3], (hidden_size, hidden_size), jnp.float32) * 0.1
    b_ih = jax.random.normal(keys[4], (hidden_size,), jnp.float32) * 0.1
    w_hh = jax.random.normal(keys[5], (hidden_size, hidden_size), jnp.float32) * 0.1
    b_hh = jax.random.normal(keys[6], (hidden_size,), jnp.float32) * 0.1
    w_out = jax.random.normal(keys[7], (hidden_size, output_size), jnp.float32) * 0.1
    b_out = jax.random.normal(keys[8], (output_size,), jnp.float32) * 0.1

    out = jax.jit(net_forward)(data, w1, b1, decay,
                               w_ih, b_ih, w_hh, b_hh, w_out, b_out)
    jax.block_until_ready(out)

    out_ref = net_reference(data, w1, b1, decay,
                            w_ih, b_ih, w_hh, b_hh, w_out, b_out)
    assert out.shape == (batch, output_size)
    assert jnp.allclose(out, out_ref, atol=5e-4, rtol=5e-4), (
        float(jnp.max(jnp.abs(out - out_ref))))

    print("KERNEL_OK")
</pallas_src>

<mosaic_0001>
module attributes {stable_mosaic.version = 11 : i64} {
  func.func @net_kernel(%arg0: memref<64x128xf32, #tpu.memory_space<vmem>>, %arg1: memref<128x128xf32, #tpu.memory_space<vmem>>, %arg2: memref<1x128xf32, #tpu.memory_space<vmem>>, %arg3: memref<1x128xf32, #tpu.memory_space<vmem>>, %arg4: memref<256x128xf32, #tpu.memory_space<vmem>>, %arg5: memref<1x128xf32, #tpu.memory_space<vmem>>, %arg6: memref<128x128xf32, #tpu.memory_space<vmem>>, %arg7: memref<1x128xf32, #tpu.memory_space<vmem>>, %arg8: memref<8x128xf32, #tpu.memory_space<vmem>>) attributes {dimension_semantics = [], scalar_prefetch = 0 : i64, scratch_operands = 0 : i64, tpu.core_type = #tpu.core_type<tc>} {
    %c0 = arith.constant 0 : index
    %c0_0 = arith.constant 0 : index
    %0 = vector.load %arg0[%c0, %c0_0] : memref<64x128xf32, #tpu.memory_space<vmem>>, vector<64x128xf32>
    %c0_1 = arith.constant 0 : index
    %c0_2 = arith.constant 0 : index
    %1 = vector.load %arg1[%c0_1, %c0_2] : memref<128x128xf32, #tpu.memory_space<vmem>>, vector<128x128xf32>
    %cst = arith.constant dense<0.000000e+00> : vector<64x128xf32>
    %2 = tpu.matmul %0, %1, %cst {dimension_numbers = #tpu.dot_dimension_numbers<[1], [0], [0], [1], [0, 0, 1, 1], [], []>} : vector<64x128xf32>, vector<128x128xf32>, vector<64x128xf32> -> vector<64x128xf32>
    %c0_3 = arith.constant 0 : index
    %c0_4 = arith.constant 0 : index
    %3 = vector.load %arg2[%c0_3, %c0_4] : memref<1x128xf32, #tpu.memory_space<vmem>>, vector<1x128xf32>
    %4 = vector.broadcast %3 : vector<1x128xf32> to vector<64x128xf32>
    %5 = arith.addf %2, %4 : vector<64x128xf32>
    %c0_5 = arith.constant 0 : index
    %c0_6 = arith.constant 0 : index
    %6 = vector.load %arg3[%c0_5, %c0_6] : memref<1x128xf32, #tpu.memory_space<vmem>>, vector<1x128xf32>
    %7 = vector.shape_cast %6 : vector<1x128xf32> to vector<1x128xf32>
    %8 = vector.broadcast %7 : vector<1x128xf32> to vector<8x128xf32>
    %c0_7 = arith.constant 0 : index
    %c0_8 = arith.constant 0 : index
    %9 = vector.load %arg5[%c0_7, %c0_8] : memref<1x128xf32, #tpu.memory_space<vmem>>, vector<1x128xf32>
    %10 = vector.shape_cast %9 : vector<1x128xf32> to vector<1x128xf32>
    %11 = vector.broadcast %10 : vector<1x128xf32> to vector<8x128xf32>
    %c0_9 = arith.constant 0 : index
    %c0_10 = arith.constant 0 : index
    %12 = vector.load %arg4[%c0_9, %c0_10] : memref<256x128xf32, #tpu.memory_space<vmem>>, vector<256x128xf32>
    %cst_11 = arith.constant 0.000000e+00 : f32
    %13 = vector.broadcast %cst_11 : f32 to vector<8x128xf32>
    %cst_12 = arith.constant 0.000000e+00 : f32
    %14 = vector.broadcast %cst_12 : f32 to vector<8x128xf32>
    %15 = vector.extract_strided_slice %5 {offsets = [0, 0], sizes = [8, 128], strides = [1, 1]} : vector<64x128xf32> to vector<8x128xf32>
    %16 = arith.addf %13, %15 : vector<8x128xf32>
    %cst_13 = arith.constant 0.000000e+00 : f32
    %17 = vector.broadcast %cst_13 : f32 to vector<8x128xf32>
    %18 = arith.maximumf %16, %17 : vector<8x128xf32>
    %cst_14 = arith.constant 0.000000e+00 : f32
    %19 = vector.broadcast %cst_14 : f32 to vector<8x128xf32>
    %20 = arith.minimumf %16, %19 : vector<8x128xf32>
    %21 = arith.mulf %20, %8 : vector<8x128xf32>
    %22 = tpu.concatenate %18, %14 in 1 : vector<8x128xf32>, vector<8x128xf32> -> vector<8x256xf32>
    %cst_15 = arith.constant dense<0.000000e+00> : vector<8x128xf32>
    %23 = tpu.matmul %22, %12, %cst_15 {dimension_numbers = #tpu.dot_dimension_numbers<[1], [0], [0], [1], [0, 0, 1, 1], [], []>} : vector<8x256xf32>, vector<256x128xf32>, vector<8x128xf32> -> vector<8x128xf32>
    %24 = arith.addf %23, %11 : vector<8x128xf32>
    %25 = math.tanh %24 : vector<8x128xf32>
    %26 = vector.extract_strided_slice %5 {offsets = [8, 0], sizes = [8, 128], strides = [1, 1]} : vector<64x128xf32> to vector<8x128xf32>
    %27 = arith.addf %21, %26 : vector<8x128xf32>
    %cst_16 = arith.constant 0.000000e+00 : f32
    %28 = vector.broadcast %cst_16 : f32 to vector<8x128xf32>
    %29 = arith.maximumf %27, %28 : vector<8x128xf32>
    %cst_17 = arith.constant 0.000000e+00 : f32
    %30 = vector.broadcast %cst_17 : f32 to vector<8x128xf32>
    %31 = arith.minimumf %27, %30 : vector<8x128xf32>
    %32 = arith.mulf %31, %8 : vector<8x128xf32>
    %33 = tpu.concatenate %29, %25 in 1 : vector<8x128xf32>, vector<8x128xf32> -> vector<8x256xf32>
    %cst_18 = arith.constant dense<0.000000e+00> : vector<8x128xf32>
    %34 = tpu.matmul %33, %12, %cst_18 {dimension_numbers = #tpu.dot_dimension_numbers<[1], [0], [0], [1], [0, 0, 1, 1], [], []>} : vector<8x256xf32>, vector<256x128xf32>, vector<8x128xf32> -> vector<8x128xf32>
    %35 = arith.addf %34, %11 : vector<8x128xf32>
    %36 = math.tanh %35 : vector<8x128xf32>
    %37 = vector.extract_strided_slice %5 {offsets = [16, 0], sizes = [8, 128], strides = [1, 1]} : vector<64x128xf32> to vector<8x128xf32>
    %38 = arith.addf %32, %37 : vector<8x128xf32>
    %cst_19 = arith.constant 0.000000e+00 : f32
    %39 = vector.broadcast %cst_19 : f32 to vector<8x128xf32>
    %40 = arith.maximumf %38, %39 : vector<8x128xf32>
    %cst_20 = arith.constant 0.000000e+00 : f32
    %41 = vector.broadcast %cst_20 : f32 to vector<8x128xf32>
    %42 = arith.minimumf %38, %41 : vector<8x128xf32>
    %43 = arith.mulf %42, %8 : vector<8x128xf32>
    %44 = tpu.concatenate %40, %36 in 1 : vector<8x128xf32>, vector<8x128xf32> -> vector<8x256xf32>
    %cst_21 = arith.constant dense<0.000000e+00> : vector<8x128xf32>
    %45 = tpu.matmul %44, %12, %cst_21 {dimension_numbers = #tpu.dot_dimension_numbers<[1], [0], [0], [1], [0, 0, 1, 1], [], []>} : vector<8x256xf32>, vector<256x128xf32>, vector<8x128xf32> -> vector<8x128xf32>
    %46 = arith.addf %45, %11 : vector<8x128xf32>
    %47 = math.tanh %46 : vector<8x128xf32>
    %48 = vector.extract_strided_slice %5 {offsets = [24, 0], sizes = [8, 128], strides = [1, 1]} : vector<64x128xf32> to vector<8x128xf32>
    %49 = arith.addf %43, %48 : vector<8x128xf32>
    %cst_22 = arith.constant 0.000000e+00 : f32
    %50 = vector.broadcast %cst_22 : f32 to vector<8x128xf32>
    %51 = arith.maximumf %49, %50 : vector<8x128xf32>
    %cst_23 = arith.constant 0.000000e+00 : f32
    %52 = vector.broadcast %cst_23 : f32 to vector<8x128xf32>
    %53 = arith.minimumf %49, %52 : vector<8x128xf32>
    %54 = arith.mulf %53, %8 : vector<8x128xf32>
    %55 = tpu.concatenate %51, %47 in 1 : vector<8x128xf32>, vector<8x128xf32> -> vector<8x256xf32>
    %cst_24 = arith.constant dense<0.000000e+00> : vector<8x128xf32>
    %56 = tpu.matmul %55, %12, %cst_24 {dimension_numbers = #tpu.dot_dimension_numbers<[1], [0], [0], [1], [0, 0, 1, 1], [], []>} : vector<8x256xf32>, vector<256x128xf32>, vector<8x128xf32> -> vector<8x128xf32>
    %57 = arith.addf %56, %11 : vector<8x128xf32>
    %58 = math.tanh %57 : vector<8x128xf32>
    %59 = vector.extract_strided_slice %5 {offsets = [32, 0], sizes = [8, 128], strides = [1, 1]} : vector<64x128xf32> to vector<8x128xf32>
    %60 = arith.addf %54, %59 : vector<8x128xf32>
    %cst_25 = arith.constant 0.000000e+00 : f32
    %61 = vector.broadcast %cst_25 : f32 to vector<8x128xf32>
    %62 = arith.maximumf %60, %61 : vector<8x128xf32>
    %cst_26 = arith.constant 0.000000e+00 : f32
    %63 = vector.broadcast %cst_26 : f32 to vector<8x128xf32>
    %64 = arith.minimumf %60, %63 : vector<8x128xf32>
    %65 = arith.mulf %64, %8 : vector<8x128xf32>
    %66 = tpu.concatenate %62, %58 in 1 : vector<8x128xf32>, vector<8x128xf32> -> vector<8x256xf32>
    %cst_27 = arith.constant dense<0.000000e+00> : vector<8x128xf32>
    %67 = tpu.matmul %66, %12, %cst_27 {dimension_numbers = #tpu.dot_dimension_numbers<[1], [0], [0], [1], [0, 0, 1, 1], [], []>} : vector<8x256xf32>, vector<256x128xf32>, vector<8x128xf32> -> vector<8x128xf32>
    %68 = arith.addf %67, %11 : vector<8x128xf32>
    %69 = math.tanh %68 : vector<8x128xf32>
    %70 = vector.extract_strided_slice %5 {offsets = [40, 0], sizes = [8, 128], strides = [1, 1]} : vector<64x128xf32> to vector<8x128xf32>
    %71 = arith.addf %65, %70 : vector<8x128xf32>
    %cst_28 = arith.constant 0.000000e+00 : f32
    %72 = vector.broadcast %cst_28 : f32 to vector<8x128xf32>
    %73 = arith.maximumf %71, %72 : vector<8x128xf32>
    %cst_29 = arith.constant 0.000000e+00 : f32
    %74 = vector.broadcast %cst_29 : f32 to vector<8x128xf32>
    %75 = arith.minimumf %71, %74 : vector<8x128xf32>
    %76 = arith.mulf %75, %8 : vector<8x128xf32>
    %77 = tpu.concatenate %73, %69 in 1 : vector<8x128xf32>, vector<8x128xf32> -> vector<8x256xf32>
    %cst_30 = arith.constant dense<0.000000e+00> : vector<8x128xf32>
    %78 = tpu.matmul %77, %12, %cst_30 {dimension_numbers = #tpu.dot_dimension_numbers<[1], [0], [0], [1], [0, 0, 1, 1], [], []>} : vector<8x256xf32>, vector<256x128xf32>, vector<8x128xf32> -> vector<8x128xf32>
    %79 = arith.addf %78, %11 : vector<8x128xf32>
    %80 = math.tanh %79 : vector<8x128xf32>
    %81 = vector.extract_strided_slice %5 {offsets = [48, 0], sizes = [8, 128], strides = [1, 1]} : vector<64x128xf32> to vector<8x128xf32>
    %82 = arith.addf %76, %81 : vector<8x128xf32>
    %cst_31 = arith.constant 0.000000e+00 : f32
    %83 = vector.broadcast %cst_31 : f32 to vector<8x128xf32>
    %84 = arith.maximumf %82, %83 : vector<8x128xf32>
    %cst_32 = arith.constant 0.000000e+00 : f32
    %85 = vector.broadcast %cst_32 : f32 to vector<8x128xf32>
    %86 = arith.minimumf %82, %85 : vector<8x128xf32>
    %87 = arith.mulf %86, %8 : vector<8x128xf32>
    %88 = tpu.concatenate %84, %80 in 1 : vector<8x128xf32>, vector<8x128xf32> -> vector<8x256xf32>
    %cst_33 = arith.constant dense<0.000000e+00> : vector<8x128xf32>
    %89 = tpu.matmul %88, %12, %cst_33 {dimension_numbers = #tpu.dot_dimension_numbers<[1], [0], [0], [1], [0, 0, 1, 1], [], []>} : vector<8x256xf32>, vector<256x128xf32>, vector<8x128xf32> -> vector<8x128xf32>
    %90 = arith.addf %89, %11 : vector<8x128xf32>
    %91 = math.tanh %90 : vector<8x128xf32>
    %92 = vector.extract_strided_slice %5 {offsets = [56, 0], sizes = [8, 128], strides = [1, 1]} : vector<64x128xf32> to vector<8x128xf32>
    %93 = arith.addf %87, %92 : vector<8x128xf32>
    %cst_34 = arith.constant 0.000000e+00 : f32
    %94 = vector.broadcast %cst_34 : f32 to vector<8x128xf32>
    %95 = arith.maximumf %93, %94 : vector<8x128xf32>
    %96 = tpu.concatenate %95, %91 in 1 : vector<8x128xf32>, vector<8x128xf32> -> vector<8x256xf32>
    %cst_35 = arith.constant dense<0.000000e+00> : vector<8x128xf32>
    %97 = tpu.matmul %96, %12, %cst_35 {dimension_numbers = #tpu.dot_dimension_numbers<[1], [0], [0], [1], [0, 0, 1, 1], [], []>} : vector<8x256xf32>, vector<256x128xf32>, vector<8x128xf32> -> vector<8x128xf32>
    %98 = arith.addf %97, %11 : vector<8x128xf32>
    %99 = math.tanh %98 : vector<8x128xf32>
    %c0_36 = arith.constant 0 : index
    %c0_37 = arith.constant 0 : index
    %100 = vector.load %arg6[%c0_36, %c0_37] : memref<128x128xf32, #tpu.memory_space<vmem>>, vector<128x128xf32>
    %cst_38 = arith.constant dense<0.000000e+00> : vector<8x128xf32>
    %101 = tpu.matmul %99, %100, %cst_38 {dimension_numbers = #tpu.dot_dimension_numbers<[1], [0], [0], [1], [0, 0, 1, 1], [], []>} : vector<8x128xf32>, vector<128x128xf32>, vector<8x128xf32> -> vector<8x128xf32>
    %c0_39 = arith.constant 0 : index
    %c0_40 = arith.constant 0 : index
    %102 = vector.load %arg7[%c0_39, %c0_40] : memref<1x128xf32, #tpu.memory_space<vmem>>, vector<1x128xf32>
    %103 = vector.broadcast %102 : vector<1x128xf32> to vector<8x128xf32>
    %104 = arith.addf %101, %103 : vector<8x128xf32>
    %c0_41 = arith.constant 0 : index
    %c0_42 = arith.constant 0 : index
    %105 = vector.load %arg8[%c0_41, %c0_42] : memref<8x128xf32, #tpu.memory_space<vmem>>, vector<8x128xf32>
    tpu.vector_store %arg8[%c0_41, %c0_42], %104 {strides = array<i32>} : memref<8x128xf32, #tpu.memory_space<vmem>>, vector<8x128xf32>,
    return
  }
}

</mosaic_0001>

<bundles_post_ra>
// kernel: net_forward.1
= control target key start
LH: loop header
LB: loop body
LE: loop exit
PB: predicated region body
PF: predicated region fallthrough
CT: control target
= control target key end

     0   :  { %vm1644_vm0 = vmmov 0   ;;  %s2116_s1 = inlined_call_operand.vmem [shape: f32[128,128], index: 1, kind: input, shape index: {}]   ;;  %s2117_s0 = inlined_call_operand.vmem [shape: f32[64,128], index: 0, kind: input, shape index: {}]   ;;  %s2118_s4 = inlined_call_operand.vmem [shape: f32[256,128], index: 4, kind: input, shape index: {}]   ;;  %s2119_s2 = inlined_call_operand.vmem [shape: f32[1,128], index: 2, kind: input, shape index: {}]   ;;  %s2120_s3 = inlined_call_operand.vmem [shape: f32[1,128], index: 3, kind: input, shape index: {}]   ;;  %s2121_s5 = inlined_call_operand.vmem [shape: f32[1,128], index: 5, kind: input, shape index: {}]   ;;  %s2122_s6 = inlined_call_operand.vmem [shape: f32[128,128], index: 6, kind: input, shape index: {}]   ;;  %s2123_s7 = inlined_call_operand.vmem [shape: f32[1,128], index: 7, kind: input, shape index: {}]   ;;  %s2124_s8 = inlined_call_operand.vmem [shape: f32[8,128], index: 8, kind: output, shape index: {}]  }
   0x1   :  { %v37_v0 = vld [vmem:[%s2116_s1] sm:$0xff]  ;;  %v38_v1 = vld [vmem:[%s2116_s1 + $0x8] sm:$0xff]  ;;  %v39_v2 = vld [vmem:[%s2116_s1 + $0x10] sm:$0xff] }
   0x2   :  { %v1311_v3 = vpack.c.bf16 %v38_v1, %v37_v0  ;;  %v40_v4 = vld [vmem:[%s2116_s1 + $0x18] sm:$0xff]  ;;  %v41_v6 = vld [vmem:[%s2116_s1 + $0x20] sm:$0xff]  ;;  %v42_v7 = vld [vmem:[%s2116_s1 + $0x28] sm:$0xff] }
   0x3   :  { %v1315_v5 = vpack.c.bf16 %v40_v4, %v39_v2  ;;  %v1319_v8 = vpack.c.bf16 %v42_v7, %v41_v6  ;;  %v29_v9 = vld [vmem:[%s2117_s0] sm:$0xff]  ;;  %v43_v10 = vld [vmem:[%s2116_s1 + $0x30] sm:$0xff]  ;;  %v44_v11 = vld [vmem:[%s2116_s1 + $0x38] sm:$0xff] }
   0x4   :  { %1312 = vmatprep.subr.bf16.mxu0 %v1311_v3  ;;  %1264 = vmatprep.mubr.f32.mxu0 %v29_v9  ;;  %v45_v12 = vld [vmem:[%s2116_s1 + $0x40] sm:$0xff]  ;;  %v46_v13 = vld [vmem:[%s2116_s1 + $0x48] sm:$0xff]  ;;  %v1323_v17 = vpack.c.bf16 %v44_v11, %v43_v10  ;;  %v197_v20 = vld [vmem:[%s2118_s4 + $0x90] sm:$0xff] }
   0x5   :  { %1314 = vmatpush3.bf16.msra.mxu0 %v1311_v3  ;;  %v195_v14 = vld [vmem:[%s2118_s4 + $0x80] sm:$0xff]  ;;  %v196_v15 = vld [vmem:[%s2118_s4 + $0x88] sm:$0xff]  ;;  %v198_v21 = vld [vmem:[%s2118_s4 + $0x98] sm:$0xff]  ;;  %v1327_v29 = vpack.c.bf16 %v46_v13, %v45_v12 }
   0x6   :  { %1316 = vmatprep.subr.bf16.mxu0 %v1315_v5  ;;  %v179_v16 = vld [vmem:[%s2118_s4] sm:$0xff]  ;;  %v1732_v18 = vpack.c.bf16 %v196_v15, %v195_v14  ;;  %v180_v19 = vld [vmem:[%s2118_s4 + $0x8] sm:$0xff]  ;;  %v1745_v23 = vpack.c.bf16 %v198_v21, %v197_v20  ;;  %v181_v24 = vld [vmem:[%s2118_s4 + $0x10] sm:$0xff] }
   0x7   :  { %v1743_v22 = vpack.c.bf16 %v180_v19, %v179_v16  ;;  %v182_v25 = vld [vmem:[%s2118_s4 + $0x18] sm:$0xff]  ;;  %v199_v26 = vld [vmem:[%s2118_s4 + $0xa0] sm:$0xff]  ;;  %v200_v27 = vld [vmem:[%s2118_s4 + $0xa8] sm:$0xff]  ;;  %v1642_v16 = vmov 0.0  }
   0x8   :  { %1344 = vmatprep.subr.bf16.mxu1 %v1732_v18  ;;  %v1761_v28 = vpack.c.bf16 %v182_v25, %v181_v24  ;;  %v47_v30 = vld [vmem:[%s2116_s1 + $0x50] sm:$0xff]  ;;  %v1767_v31 = vpack.c.bf16 %v200_v27, %v199_v26  ;;  %v183_v32 = vld [vmem:[%s2118_s4 + $0x20] sm:$0xff]  ;;  %v184_v33 = vld [vmem:[%s2118_s4 + $0x28] sm:$0xff]  ;;  %279 = vmatprep.mubr.f32.mxu1 %v1642_v16 }
   0x9   :  { %1318 = vmatpush3.bf16.msra.mxu0 %v1315_v5  ;;  %1346 = vmatpush3.bf16.msra.mxu1 %v1743_v22  ;;  %v48_v34 = vld [vmem:[%s2116_s1 + $0x58] sm:$0xff]  ;;  %v201_v35 = vld [vmem:[%s2118_s4 + $0xb0] sm:$0xff]  ;;  %v1785_v37 = vpack.c.bf16 %v184_v33, %v183_v32  ;;  %v49_v39 = vld [vmem:[%s2116_s1 + $0x60] sm:$0xff] }
   0xa   :  { %1320 = vmatprep.subr.bf16.mxu0 %v1319_v8  ;;  %1348 = vmatprep.subr.bf16.mxu1 %v1745_v23  ;;  %v202_v36 = vld [vmem:[%s2118_s4 + $0xb8] sm:$0xff]  ;;  %v1331_v38 = vpack.c.bf16 %v48_v34, %v47_v30  ;;  %v185_v41 = vld [vmem:[%s2118_s4 + $0x30] sm:$0xff]  ;;  %v50_v43 = vld [vmem:[%s2116_s1 + $0x68] sm:$0xff] }
   0xb   :  { %v1791_v40 = vpack.c.bf16 %v202_v36, %v201_v35  ;;  %v186_v42 = vld [vmem:[%s2118_s4 + $0x38] sm:$0xff]  ;;  %v203_v44 = vld [vmem:[%s2118_s4 + $0xc0] sm:$0xff]  ;;  %v204_v45 = vld [vmem:[%s2118_s4 + $0xc8] sm:$0xff]  ;;  %v1335_v47 = vpack.c.bf16 %v50_v43, %v49_v39 }
   0xc   :  { %v1809_v46 = vpack.c.bf16 %v186_v42, %v185_v41  ;;  %v51_v48 = vld [vmem:[%s2116_s1 + $0x70] sm:$0xff]  ;;  %v1815_v49 = vpack.c.bf16 %v204_v45, %v203_v44  ;;  %v187_v50 = vld [vmem:[%s2118_s4 + $0x40] sm:$0xff]  ;;  %v188_v51 = vld [vmem:[%s2118_s4 + $0x48] sm:$0xff] }
   0xd   :  { %1322 = vmatpush3.bf16.msra.mxu0 %v1319_v8  ;;  %1350 = vmatpush3.bf16.msra.mxu1 %v1761_v28  ;;  %v52_v52 = vld [vmem:[%s2116_s1 + $0x78] sm:$0xff]  ;;  %v205_v53 = vld [vmem:[%s2118_s4 + $0xd0] sm:$0xff]  ;;  %v1833_v55 = vpack.c.bf16 %v188_v51, %v187_v50  ;;  %v207_v60 = vld [vmem:[%s2118_s4 + $0xe0] sm:$0xff] }
   0xe   :  { %1324 = vmatprep.subr.bf16.mxu0 %v1323_v17  ;;  %1352 = vmatprep.subr.bf16.mxu1 %v1767_v31  ;;  %v206_v54 = vld [vmem:[%s2118_s4 + $0xd8] sm:$0xff]  ;;  %v1339_v56 = vpack.c.bf16 %v52_v52, %v51_v48  ;;  %v189_v58 = vld [vmem:[%s2118_s4 + $0x50] sm:$0xff]  ;;  %v208_v61 = vld [vmem:[%s2118_s4 + $0xe8] sm:$0xff] }
   0xf   :  { %v1836_v57 = vpack.c.bf16 %v206_v54, %v205_v53  ;;  %v190_v59 = vld [vmem:[%s2118_s4 + $0x58] sm:$0xff]  ;;  %v1854_v63 = vpack.c.bf16 %v208_v61, %v207_v60  ;;  %v191_v0 = vld [vmem:[%s2118_s4 + $0x60] sm:$0xff]  ;;  %v192_v1 = vld [vmem:[%s2118_s4 + $0x68] sm:$0xff] }
  0x10   :  { %v1851_v62 = vpack.c.bf16 %v190_v59, %v189_v58  ;;  %v30_v2 = vld [vmem:[%s2117_s0 + $0x8] sm:$0xff]  ;;  %v1866_v3 = vpack.c.bf16 %v192_v1, %v191_v0  ;;  %v31_v4 = vld [vmem:[%s2117_s0 + $0x10] sm:$0xff]  ;;  %v32_v5 = vld [vmem:[%s2117_s0 + $0x18] sm:$0xff] }
  0x11   :  { %1326 = vmatpush3.bf16.msra.mxu0 %v1323_v17  ;;  %1354 = vmatpush3.bf16.msra.mxu1 %v1785_v37  ;;  %v33_v6 = vld [vmem:[%s2117_s0 + $0x20] sm:$0xff]  ;;  %v34_v7 = vld [vmem:[%s2117_s0 + $0x28] sm:$0xff]  ;;  %v35_v8 = vld [vmem:[%s2117_s0 + $0x30] sm:$0xff] }
  0x12   :  { %1328 = vmatprep.subr.bf16.mxu0 %v1327_v29  ;;  %1356 = vmatprep.subr.bf16.mxu1 %v1791_v40  ;;  %v36_v9 = vld [vmem:[%s2117_s0 + $0x38] sm:$0xff]  ;;  %v209_v10 = vld [vmem:[%s2118_s4 + $0xf0] sm:$0xff]  ;;  %v907_v17 = vld [vmem:[%s2119_s2] ss:$0 sm:$0xff] }
  0x13   :  { %v210_v11 = vld [vmem:[%s2118_s4 + $0xf8] sm:$0xff]  ;;  %v193_v13 = vld [vmem:[%s2118_s4 + $0x70] sm:$0xff]  ;;  %v908_v25 = vld [vmem:[%s2120_s3] ss:$0 sm:$0xff] }
  0x14   :  { %v1908_v12 = vpack.c.bf16 %v210_v11, %v209_v10  ;;  %v194_v14 = vld [vmem:[%s2118_s4 + $0x78] sm:$0xff] }
  0x15   :  { %1330 = vmatpush3.bf16.msra.mxu0 %v1327_v29  ;;  %1358 = vmatpush3.bf16.msra.mxu1 %v1809_v46  ;;  %v1916_v15 = vpack.c.bf16 %v194_v14, %v193_v13 }
  0x16   :  { %1332 = vmatprep.subr.bf16.mxu0 %v1331_v38  ;;  %1360 = vmatprep.subr.bf16.mxu1 %v1815_v49 }
  0x19   :  { %1334 = vmatpush3.bf16.msra.mxu0 %v1331_v38  ;;  %1362 = vmatpush3.bf16.msra.mxu1 %v1833_v55 }
  0x1a   :  { %1336 = vmatprep.subr.bf16.mxu0 %v1335_v47  ;;  %1364 = vmatprep.subr.bf16.mxu1 %v1836_v57 }
  0x1d   :  { %1338 = vmatpush3.bf16.msra.mxu0 %v1335_v47  ;;  %1366 = vmatpush3.bf16.msra.mxu1 %v1851_v62 }
  0x1e   :  { %1340 = vmatprep.subr.bf16.mxu0 %v1339_v56  ;;  %1368 = vmatprep.subr.bf16.mxu1 %v1854_v63 }
  0x21   :  { %1342 = vmatpush3.bf16.msra.mxu0 %v1339_v56  ;;  %1370 = vmatpush3.bf16.msra.mxu1 %v1866_v3 }
  0x22   :  { %1376 = vmatprep.subr.bf16.mxu0 %v1732_v18  ;;  %1372 = vmatprep.subr.bf16.mxu1 %v1908_v12 }
  0x24   :  { %1265 = vmatmul.mubr.f32.vlgmr.msra.gmra.mrb[0].mxu0 %v30_v2 }
  0x25   :  { %1267 = vmatprep.mubr.f32.mxu0 %v31_v4  ;;  %1378 = vmatpush3.bf16.msra.mxu0 %v1743_v22 }
  0x26   :  { %1380 = vmatprep.subr.bf16.mxu0 %v1745_v23  ;;  %1374 = vmatpush3.bf16.msra.mxu1 %v1916_v15 }
  0x27   :  { %1408 = vmatprep.subr.bf16.mxu1 %v1732_v18 }
  0x28   :  { %1268 = vmatmul.mubr.f32.gmra.mrb[2].mxu0 %v32_v5 }
  0x29   :  { %1270 = vmatprep.mubr.f32.mxu0 %v33_v6  ;;  %1382 = vmatpush3.bf16.msra.mxu0 %v1761_v28 }
  0x2a   :  { %1384 = vmatprep.subr.bf16.mxu0 %v1767_v31 }
  0x2c   :  { %1271 = vmatmul.mubr.f32.gmra.mrb[4].mxu0 %v34_v7 }
  0x2d   :  { %1273 = vmatprep.mubr.f32.mxu0 %v35_v8  ;;  %1386 = vmatpush3.bf16.msra.mxu0 %v1785_v37  ;;  %v1967_v8 = vld [vmem:[%s2121_s5] ss:$0 sm:$0xff] }
  0x2e   :  { %1388 = vmatprep.subr.bf16.mxu0 %v1791_v40 }
  0x30   :  { %1274 = vmatmul.mubr.f32.gmra.mrb[6].mxu0 %v36_v9 }
  0x31   :  { %1390 = vmatpush3.bf16.msra.mxu0 %v1809_v46 }
  0x32   :  { %1392 = vmatprep.subr.bf16.mxu0 %v1815_v49 }
  0x35   :  { %1394 = vmatpush3.bf16.msra.mxu0 %v1833_v55 }
  0x36   :  { %1396 = vmatprep.subr.bf16.mxu0 %v1836_v57 }
  0x39   :  { %1398 = vmatpush3.bf16.msra.mxu0 %v1851_v62 }
  0x3a   :  { %1400 = vmatprep.subr.bf16.mxu0 %v1854_v63 }
  0x3d   :  { %1402 = vmatpush3.bf16.msra.mxu0 %v1866_v3 }
  0x3e   :  { %1404 = vmatprep.subr.bf16.mxu0 %v1908_v12 }
  0x41   :  { %1406 = vmatpush3.bf16.msra.mxu0 %v1916_v15 }
  0x42   :  { %1440 = vmatprep.subr.bf16.mxu0 %v1732_v18 }
  0xf7   :  { %v1266_v19 = vpop.f32.mrb[0].mxu0 }
  0xf8   :  { %v132_v20 = vadd.f32 %v1266_v19, %v907_v17  ;;  %v126_v21 = vpop.f32.mrb[1].mxu0 }
  0xf9   :  { %v127_v24 = vadd.f32 %v907_v17, %v126_v21 }
  0xfb   :  { %v212_v26 = vmax.f32 %v127_v24, 0.0  ;;  %v213_v27 = vmin.f32 %v127_v24, 0.0  ;;  %v1269_v29 = vpop.f32.mrb[2].mxu0 }
  0xfc   :  { %v142_v30 = vadd.f32 %v1269_v29, %v907_v17  ;;  %v136_v32 = vpop.f32.mrb[3].mxu0 }
  0xfd   :  { %v214_v33 = vmul.f32 %v908_v25, %v213_v27  ;;  %280 = vmatmul.mubr.f32.vlgmr.msra.gmra.mrb[0].mxu1 %v212_v26  ;;  %v137_v34 = vadd.f32 %v907_v17, %v136_v32 }
  0xfe   :  { %1410 = vmatpush3.bf16.msra.mxu1 %v1743_v22 }
  0xff   :  { %v286_v35 = vadd.f32 %v214_v33, %v132_v20  ;;  %v1272_v36 = vpop.f32.mrb[4].mxu0  ;;  %1412 = vmatprep.subr.bf16.mxu1 %v1745_v23 }
 0x100   :  { %v152_v38 = vadd.f32 %v1272_v36, %v907_v17  ;;  %v146_v39 = vpop.f32.mrb[5].mxu0 }
 0x101   :  { %v288_v41 = vmin.f32 %v286_v35, 0.0  ;;  %v147_v42 = vadd.f32 %v907_v17, %v146_v39  ;;  %v287_v14 = vmax.f32 %v286_v35, 0.0 }
 0x102   :  { %1414 = vmatpush3.bf16.msra.mxu1 %v1761_v28 }
 0x103   :  { %v289_v43 = vmul.f32 %v908_v25, %v288_v41  ;;  %v1275_v44 = vpop.f32.mrb[6].mxu0  ;;  %1416 = vmatprep.subr.bf16.mxu1 %v1767_v31 }
 0x104   :  { %v162_v45 = vadd.f32 %v1275_v44, %v907_v17  ;;  %v156_v47 = vpop.f32.mrb[7].mxu0 }
 0x105   :  { %v1935_v48 = vadd.f32 %v289_v43, %v137_v34  ;;  %v157_v50 = vadd.f32 %v907_v17, %v156_v47 }
 0x106   :  { %1418 = vmatpush3.bf16.msra.mxu1 %v1785_v37 }
 0x107   :  { %v363_v51 = vmin.f32 %v1935_v48, 0.0  ;;  %1420 = vmatprep.subr.bf16.mxu1 %v1791_v40 }
 0x109   :  { %v364_v52 = vmul.f32 %v908_v25, %v363_v51  ;;  %v816_v51 = vld [vmem:[%s2122_s6 + $0x38] sm:$0xff] }
 0x10a   :  { %1422 = vmatpush3.bf16.msra.mxu1 %v1809_v46 }
 0x10b   :  { %v1941_v53 = vadd.f32 %v364_v52, %v142_v30  ;;  %1424 = vmatprep.subr.bf16.mxu1 %v1815_v49 }
 0x10d   :  { %v438_v54 = vmin.f32 %v1941_v53, 0.0  ;;  %v437_v33 = vmax.f32 %v1941_v53, 0.0 }
 0x10e   :  { %1426 = vmatpush3.bf16.msra.mxu1 %v1833_v55 }
 0x10f   :  { %v439_v56 = vmul.f32 %v908_v25, %v438_v54  ;;  %1428 = vmatprep.subr.bf16.mxu1 %v1836_v57 }
 0x111   :  { %v1947_v58 = vadd.f32 %v439_v56, %v147_v42 }
 0x112   :  { %1430 = vmatpush3.bf16.msra.mxu1 %v1851_v62 }
 0x113   :  { %v513_v59 = vmin.f32 %v1947_v58, 0.0  ;;  %1432 = vmatprep.subr.bf16.mxu1 %v1854_v63  ;;  %v512_v41 = vmax.f32 %v1947_v58, 0.0 }
 0x115   :  { %v514_v60 = vmul.f32 %v908_v25, %v513_v59 }
 0x116   :  { %1434 = vmatpush3.bf16.msra.mxu1 %v1866_v3 }
 0x117   :  { %v1953_v61 = vadd.f32 %v514_v60, %v152_v38  ;;  %1436 = vmatprep.subr.bf16.mxu1 %v1908_v12 }
 0x119   :  { %v588_v0 = vmin.f32 %v1953_v61, 0.0  ;;  %v587_v47 = vmax.f32 %v1953_v61, 0.0  ;;  %v817_v61 = vld [vmem:[%s2122_s6 + $0x40] sm:$0xff] }
 0x11a   :  { %1438 = vmatpush3.bf16.msra.mxu1 %v1916_v15 }
 0x11b   :  { %v589_v1 = vmul.f32 %v908_v25, %v588_v0  ;;  %1472 = vmatprep.subr.bf16.mxu1 %v1732_v18  ;;  %v818_v0 = vld [vmem:[%s2122_s6 + $0x48] sm:$0xff] }
 0x11d   :  { %v1959_v2 = vadd.f32 %v589_v1, %v157_v50  ;;  %v815_v50 = vld [vmem:[%s2122_s6 + $0x30] sm:$0xff]  ;;  %v1612_v1 = vpack.c.bf16 %v818_v0, %v817_v61 }
 0x11e   :  { %v1609_v52 = vpack.c.bf16 %v816_v51, %v815_v50 }
 0x11f   :  { %v663_v4 = vmin.f32 %v1959_v2, 0.0 }
 0x121   :  { %v664_v5 = vmul.f32 %v908_v25, %v663_v4  ;;  %v362_v25 = vmax.f32 %v1935_v48, 0.0  ;;  %v820_v4 = vld [vmem:[%s2122_s6 + $0x58] sm:$0xff] }
 0x123   :  { %v1962_v6 = vadd.f32 %v664_v5, %v162_v45 }
 0x125   :  { %v737_v60 = vmax.f32 %v1962_v6, 0.0  ;;  %v821_v6 = vld [vmem:[%s2122_s6 + $0x60] sm:$0xff] }
 0x1d0   :  { %v967_v7 = vpop.f32.mrb[0].mxu1 }
 0x1d1   :  { %v968_v9 = vpop.f32.mrb[1].mxu1 }
 0x1d2   :  { %v969_v10 = vadd.f32 %v968_v9, %v967_v7  ;;  %v822_v7 = vld [vmem:[%s2122_s6 + $0x68] sm:$0xff] }
 0x1d3   :  { %v1618_v9 = vpack.c.bf16 %v822_v7, %v821_v6 }
 0x1d4   :  { %v282_v11 = vadd.f32 %v969_v10, %v1967_v8  ;;  %v823_v10 = vld [vmem:[%s2122_s6 + $0x70] sm:$0xff] }
 0x1d6   :  { %1626 = vtanh.f32 %v282_v11  ;;  %v824_v11 = vld [vmem:[%s2122_s6 + $0x78] sm:$0xff] }
 0x1e0   :  { %v1627_v13 = vpop.eup %1626 }
 0x1e1   :  { %354 = vmatprep.mubr.f32.mxu0 %v1627_v13  ;;  %v1621_v13 = vpack.c.bf16 %v824_v11, %v823_v10 }
 0x1e2   :  { %355 = vmatmul.mubr.f32.vlgmr.msra.gmra.mrb[8].mxu0 %v287_v14 }
 0x1e3   :  { %1442 = vmatpush3.bf16.msra.mxu0 %v1743_v22 }
 0x1e4   :  { %1444 = vmatprep.subr.bf16.mxu0 %v1745_v23 }
 0x1e7   :  { %1446 = vmatpush3.bf16.msra.mxu0 %v1761_v28 }
 0x1e8   :  { %1448 = vmatprep.subr.bf16.mxu0 %v1767_v31 }
 0x1eb   :  { %1450 = vmatpush3.bf16.msra.mxu0 %v1785_v37 }
 0x1ec   :  { %1452 = vmatprep.subr.bf16.mxu0 %v1791_v40 }
 0x1ef   :  { %1454 = vmatpush3.bf16.msra.mxu0 %v1809_v46 }
 0x1f0   :  { %1456 = vmatprep.subr.bf16.mxu0 %v1815_v49 }
 0x1f3   :  { %1458 = vmatpush3.bf16.msra.mxu0 %v1833_v55 }
 0x1f4   :  { %1460 = vmatprep.subr.bf16.mxu0 %v1836_v57 }
 0x1f7   :  { %1462 = vmatpush3.bf16.msra.mxu0 %v1851_v62 }
 0x1f8   :  { %1464 = vmatprep.subr.bf16.mxu0 %v1854_v63 }
 0x1fb   :  { %1466 = vmatpush3.bf16.msra.mxu0 %v1866_v3 }
 0x1fc   :  { %1468 = vmatprep.subr.bf16.mxu0 %v1908_v12 }
 0x1ff   :  { %1470 = vmatpush3.bf16.msra.mxu0 %v1916_v15 }
 0x200   :  { %1504 = vmatprep.subr.bf16.mxu0 %v1732_v18 }
 0x2b5   :  { %v1002_v17 = vpop.f32.mrb[8].mxu0 }
 0x2b6   :  { %v1003_v19 = vpop.f32.mrb[9].mxu0 }
 0x2b7   :  { %v1004_v20 = vadd.f32 %v1003_v19, %v1002_v17 }
 0x2b9   :  { %v357_v21 = vadd.f32 %v1004_v20, %v1967_v8 }
 0x2bb   :  { %1628 = vtanh.f32 %v357_v21 }
 0x2c5   :  { %v1629_v24 = vpop.eup %1628 }
 0x2c6   :  { %429 = vmatprep.mubr.f32.mxu1 %v1629_v24  ;;  %v910_v24 = vld [vmem:[%s2123_s7] ss:$0 sm:$0xff] }
 0x2c7   :  { %430 = vmatmul.mubr.f32.vlgmr.msra.gmra.mrb[2].mxu1 %v362_v25 }
 0x2c8   :  { %1474 = vmatpush3.bf16.msra.mxu1 %v1743_v22 }
 0x2c9   :  { %1476 = vmatprep.subr.bf16.mxu1 %v1745_v23 }
 0x2cc   :  { %1478 = vmatpush3.bf16.msra.mxu1 %v1761_v28 }
 0x2cd   :  { %1480 = vmatprep.subr.bf16.mxu1 %v1767_v31 }
 0x2d0   :  { %1482 = vmatpush3.bf16.msra.mxu1 %v1785_v37 }
 0x2d1   :  { %1484 = vmatprep.subr.bf16.mxu1 %v1791_v40 }
 0x2d4   :  { %1486 = vmatpush3.bf16.msra.mxu1 %v1809_v46 }
 0x2d5   :  { %1488 = vmatprep.subr.bf16.mxu1 %v1815_v49 }
 0x2d8   :  { %1490 = vmatpush3.bf16.msra.mxu1 %v1833_v55 }
 0x2d9   :  { %1492 = vmatprep.subr.bf16.mxu1 %v1836_v57 }
 0x2dc   :  { %1494 = vmatpush3.bf16.msra.mxu1 %v1851_v62 }
 0x2dd   :  { %1496 = vmatprep.subr.bf16.mxu1 %v1854_v63 }
 0x2e0   :  { %1498 = vmatpush3.bf16.msra.mxu1 %v1866_v3 }
 0x2e1   :  { %1500 = vmatprep.subr.bf16.mxu1 %v1908_v12 }
 0x2e4   :  { %1502 = vmatpush3.bf16.msra.mxu1 %v1916_v15 }
 0x2e5   :  { %1536 = vmatprep.subr.bf16.mxu1 %v1732_v18 }
 0x39a   :  { %v1037_v26 = vpop.f32.mrb[2].mxu1 }
 0x39b   :  { %v1038_v27 = vpop.f32.mrb[3].mxu1 }
 0x39c   :  { %v1039_v29 = vadd.f32 %v1038_v27, %v1037_v26 }
 0x39e   :  { %v432_v30 = vadd.f32 %v1039_v29, %v1967_v8 }
 0x3a0   :  { %1630 = vtanh.f32 %v432_v30 }
 0x3aa   :  { %v1631_v32 = vpop.eup %1630 }
 0x3ab   :  { %504 = vmatprep.mubr.f32.mxu0 %v1631_v32 }
 0x3ac   :  { %505 = vmatmul.mubr.f32.vlgmr.msra.gmra.mrb[10].mxu0 %v437_v33 }
 0x3ad   :  { %1506 = vmatpush3.bf16.msra.mxu0 %v1743_v22 }
 0x3ae   :  { %1508 = vmatprep.subr.bf16.mxu0 %v1745_v23 }
 0x3b1   :  { %1510 = vmatpush3.bf16.msra.mxu0 %v1761_v28 }
 0x3b2   :  { %1512 = vmatprep.subr.bf16.mxu0 %v1767_v31 }
 0x3b5   :  { %1514 = vmatpush3.bf16.msra.mxu0 %v1785_v37 }
 0x3b6   :  { %1516 = vmatprep.subr.bf16.mxu0 %v1791_v40 }
 0x3b9   :  { %1518 = vmatpush3.bf16.msra.mxu0 %v1809_v46 }
 0x3ba   :  { %1520 = vmatprep.subr.bf16.mxu0 %v1815_v49 }
 0x3bd   :  { %1522 = vmatpush3.bf16.msra.mxu0 %v1833_v55 }
 0x3be   :  { %1524 = vmatprep.subr.bf16.mxu0 %v1836_v57 }
 0x3c1   :  { %1526 = vmatpush3.bf16.msra.mxu0 %v1851_v62 }
 0x3c2   :  { %1528 = vmatprep.subr.bf16.mxu0 %v1854_v63 }
 0x3c5   :  { %1530 = vmatpush3.bf16.msra.mxu0 %v1866_v3 }
 0x3c6   :  { %1532 = vmatprep.subr.bf16.mxu0 %v1908_v12 }
 0x3c9   :  { %1534 = vmatpush3.bf16.msra.mxu0 %v1916_v15 }
 0x3ca   :  { %1568 = vmatprep.subr.bf16.mxu0 %v1732_v18 }
 0x47f   :  { %v1072_v34 = vpop.f32.mrb[10].mxu0 }
 0x480   :  { %v1073_v35 = vpop.f32.mrb[11].mxu0 }
 0x481   :  { %v1074_v36 = vadd.f32 %v1073_v35, %v1072_v34 }
 0x483   :  { %v507_v38 = vadd.f32 %v1074_v36, %v1967_v8 }
 0x485   :  { %1632 = vtanh.f32 %v507_v38 }
 0x48f   :  { %v1633_v39 = vpop.eup %1632 }
 0x490   :  { %579 = vmatprep.mubr.f32.mxu1 %v1633_v39 }
 0x491   :  { %580 = vmatmul.mubr.f32.vlgmr.msra.gmra.mrb[4].mxu1 %v512_v41 }
 0x492   :  { %1538 = vmatpush3.bf16.msra.mxu1 %v1743_v22 }
 0x493   :  { %1540 = vmatprep.subr.bf16.mxu1 %v1745_v23 }
 0x496   :  { %1542 = vmatpush3.bf16.msra.mxu1 %v1761_v28 }
 0x497   :  { %1544 = vmatprep.subr.bf16.mxu1 %v1767_v31 }
 0x49a   :  { %1546 = vmatpush3.bf16.msra.mxu1 %v1785_v37 }
 0x49b   :  { %1548 = vmatprep.subr.bf16.mxu1 %v1791_v40 }
 0x49e   :  { %1550 = vmatpush3.bf16.msra.mxu1 %v1809_v46 }
 0x49f   :  { %1552 = vmatprep.subr.bf16.mxu1 %v1815_v49 }
 0x4a2   :  { %1554 = vmatpush3.bf16.msra.mxu1 %v1833_v55 }
 0x4a3   :  { %1556 = vmatprep.subr.bf16.mxu1 %v1836_v57 }
 0x4a6   :  { %1558 = vmatpush3.bf16.msra.mxu1 %v1851_v62 }
 0x4a7   :  { %1560 = vmatprep.subr.bf16.mxu1 %v1854_v63 }
 0x4aa   :  { %1562 = vmatpush3.bf16.msra.mxu1 %v1866_v3 }
 0x4ab   :  { %1564 = vmatprep.subr.bf16.mxu1 %v1908_v12 }
 0x4ae   :  { %1566 = vmatpush3.bf16.msra.mxu1 %v1916_v15 }
 0x564   :  { %v1107_v18 = vpop.f32.mrb[4].mxu1 }
 0x565   :  { %v1108_v42 = vpop.f32.mrb[5].mxu1 }
 0x566   :  { %v1109_v43 = vadd.f32 %v1108_v42, %v1107_v18 }
 0x568   :  { %v582_v44 = vadd.f32 %v1109_v43, %v1967_v8 }
 0x56a   :  { %1634 = vtanh.f32 %v582_v44 }
 0x574   :  { %v1635_v45 = vpop.eup %1634 }
 0x575   :  { %654 = vmatprep.mubr.f32.mxu0 %v1635_v45 }
 0x576   :  { %655 = vmatmul.mubr.f32.vlgmr.msra.gmra.mrb[12].mxu0 %v587_v47 }
 0x577   :  { %1570 = vmatpush3.bf16.msra.mxu0 %v1743_v22 }
 0x578   :  { %1572 = vmatprep.subr.bf16.mxu0 %v1745_v23 }
 0x57b   :  { %1574 = vmatpush3.bf16.msra.mxu0 %v1761_v28 }
 0x57c   :  { %1576 = vmatprep.subr.bf16.mxu0 %v1767_v31 }
 0x57f   :  { %1578 = vmatpush3.bf16.msra.mxu0 %v1785_v37 }
 0x580   :  { %1580 = vmatprep.subr.bf16.mxu0 %v1791_v40  ;;  %v662_v40 = vmax.f32 %v1959_v2, 0.0  ;;  %v819_v2 = vld [vmem:[%s2122_s6 + $0x50] sm:$0xff] }
 0x581   :  { %v1615_v5 = vpack.c.bf16 %v820_v4, %v819_v2 }
 0x583   :  { %1582 = vmatpush3.bf16.msra.mxu0 %v1809_v46  ;;  %v1643_v46 = vmov 0.0|0.0  }
 0x584   :  { %1584 = vmatprep.subr.bf16.mxu0 %v1815_v49  ;;  %1599 = vmatprep.subr.bf16.mxu1 %v1643_v46  ;;  %v809_v49 = vld [vmem:[%s2122_s6] sm:$0xff] }
 0x587   :  { %1586 = vmatpush3.bf16.msra.mxu0 %v1833_v55  ;;  %v810_v55 = vld [vmem:[%s2122_s6 + $0x8] sm:$0xff] }
 0x588   :  { %1588 = vmatprep.subr.bf16.mxu0 %v1836_v57  ;;  %v811_v57 = vld [vmem:[%s2122_s6 + $0x10] sm:$0xff] }
 0x58b   :  { %1590 = vmatpush3.bf16.msra.mxu0 %v1851_v62  ;;  %v1600_v62 = vpack.c.bf16 %v810_v55, %v809_v49 }
 0x58c   :  { %1592 = vmatprep.subr.bf16.mxu0 %v1854_v63  ;;  %v812_v63 = vld [vmem:[%s2122_s6 + $0x18] sm:$0xff] }
 0x58f   :  { %1594 = vmatpush3.bf16.msra.mxu0 %v1866_v3  ;;  %v1603_v3 = vpack.c.bf16 %v812_v63, %v811_v57 }
 0x590   :  { %1596 = vmatprep.subr.bf16.mxu0 %v1908_v12  ;;  %v813_v12 = vld [vmem:[%s2122_s6 + $0x20] sm:$0xff] }
 0x593   :  { %1598 = vmatpush3.bf16.msra.mxu0 %v1916_v15  ;;  %v814_v15 = vld [vmem:[%s2122_s6 + $0x28] sm:$0xff] }
 0x594   :  { %v1606_v48 = vpack.c.bf16 %v814_v15, %v813_v12 }
 0x649   :  { %v1142_v22 = vpop.f32.mrb[12].mxu0 }
 0x64a   :  { %v1143_v23 = vpop.f32.mrb[13].mxu0 }
 0x64b   :  { %v1144_v28 = vadd.f32 %v1143_v23, %v1142_v22 }
 0x64d   :  { %v657_v31 = vadd.f32 %v1144_v28, %v1967_v8 }
 0x64f   :  { %1636 = vtanh.f32 %v657_v31 }
 0x659   :  { %v1637_v37 = vpop.eup %1636 }
 0x65a   :  { %729 = vmatprep.mubr.f32.mxu1 %v1637_v37 }
 0x65b   :  { %730 = vmatmul.mubr.f32.vlgmr.msra.gmra.mrb[6].mxu1 %v662_v40 }
 0x65c   :  { %1601 = vmatpush3.bf16.msra.mxu1 %v1600_v62  ;;  %1308 = vmatprep.mubr.msk.f32.mxu1 %vm1644_vm0, %v1642_v16 }
 0x65d   :  { %1602 = vmatprep.subr.bf16.mxu1 %v1643_v46 }
 0x660   :  { %1604 = vmatpush3.bf16.msra.mxu1 %v1603_v3 }
 0x661   :  { %1605 = vmatprep.subr.bf16.mxu1 %v1643_v46 }
 0x664   :  { %1607 = vmatpush3.bf16.msra.mxu1 %v1606_v48 }
 0x665   :  { %1608 = vmatprep.subr.bf16.mxu1 %v1643_v46 }
 0x668   :  { %1610 = vmatpush3.bf16.msra.mxu1 %v1609_v52 }
 0x669   :  { %1611 = vmatprep.subr.bf16.mxu1 %v1643_v46 }
 0x66c   :  { %1613 = vmatpush3.bf16.msra.mxu1 %v1612_v1 }
 0x66d   :  { %1614 = vmatprep.subr.bf16.mxu1 %v1643_v46 }
 0x670   :  { %1616 = vmatpush3.bf16.msra.mxu1 %v1615_v5 }
 0x671   :  { %1617 = vmatprep.subr.bf16.mxu1 %v1643_v46 }
 0x674   :  { %1619 = vmatpush3.bf16.msra.mxu1 %v1618_v9 }
 0x675   :  { %1620 = vmatprep.subr.bf16.mxu1 %v1643_v46 }
 0x678   :  { %1622 = vmatpush3.bf16.msra.mxu1 %v1621_v13 }
 0x72e   :  { %v1177_v53 = vpop.f32.mrb[6].mxu1 }
 0x72f   :  { %v1178_v54 = vpop.f32.mrb[7].mxu1 }
 0x730   :  { %v1179_v56 = vadd.f32 %v1178_v54, %v1177_v53 }
 0x732   :  { %v732_v58 = vadd.f32 %v1179_v56, %v1967_v8 }
 0x734   :  { %1638 = vtanh.f32 %v732_v58 }
 0x73e   :  { %v1639_v59 = vpop.eup %1638 }
 0x73f   :  { %802 = vmatprep.mubr.f32.mxu0 %v1639_v59 }
 0x740   :  { %803 = vmatmul.mubr.f32.vlgmr.msra.gmra.mrb[14].mxu0 %v737_v60 }
 0x813   :  { %v1212_v14 = vpop.f32.mrb[14].mxu0 }
 0x814   :  { %v1213_v17 = vpop.f32.mrb[15].mxu0 }
 0x815   :  { %v1214_v19 = vadd.f32 %v1213_v17, %v1212_v14 }
 0x817   :  { %v805_v20 = vadd.f32 %v1214_v19, %v1967_v8 }
 0x819   :  { %1640 = vtanh.f32 %v805_v20 }
 0x823   :  { %v1641_v21 = vpop.eup %1640 }
 0x824   :  { %1309 = vmatmul.mubr.f32.vlgmr.msra.gmra.mrb[8].mxu1 %v1641_v21 }
 0x8f7   :  { %v898_v25 = vpop.f32.mrb[8].mxu1 }
 0x8f8   :  { %v899_v26 = vadd.f32 %v910_v24, %v898_v25  ;;  %v1310_v27 = vpop.f32.mrb[9].mxu1 }
 0x8fa   :  { %902 = vst [vmem:[%s2124_s8] sm:$0xff] %v899_v26 }

</bundles_post_ra>
